<compile_context>
chip_gen: v7x
topology: tpu7x:2x2x1
jax: 0.10.0
libtpu: 0.0.40
codegen_flags: <defaults>
</compile_context>

<pallas_src>
import jax
import jax.numpy as jnp
from jax.experimental import pallas as pl
from jax.experimental.pallas import tpu as pltpu


def _mlp_policy_kernel(x_ref, w1_ref, b1_ref, o_ref):
    # x_ref:  (bm, C)  VMEM   batch tile on sublanes, features on lanes
    # w1_ref: (C, H)   VMEM   affine1 weight, pre-transposed, grid-resident
    # b1_ref: (1, H)   VMEM   affine1 bias (H = one lane width)
    # o_ref:  (bm, H)
    h = jnp.dot(x_ref[...], w1_ref[...], preferred_element_type=jnp.float32)
    h = h + b1_ref[...]                       # f32 epilogue (keep f32 on v5e)
    o_ref[...] = jnp.maximum(h, 0.0).astype(o_ref.dtype)


def _round_up(n, m):
    return ((n + m - 1) // m) * m


def discrete_mlp_policy_forward(x, w1_t, b1, *, block_b=None):
    """relu(affine1(x)) via a Pallas kernel.

    x:    (B, C)  f32 or bf16
    w1_t: (C, H)  pre-transposed affine1 weight (torch weight is (H, C))
    b1:   (H,)
    returns (B, H) in x.dtype
    """
    B, C = x.shape
    H = w1_t.shape[1]

    # Keep the matmul operands in one dtype (explicit bf16 MXU path if x is
    # bf16); keep the bias / epilogue in f32.
    if w1_t.dtype != x.dtype:
        w1_t = w1_t.astype(x.dtype)
    b1_2d = b1.reshape(1, H).astype(jnp.float32)

    out_dtype = x.dtype
    out_bytes = B * H * jnp.dtype(out_dtype).itemsize

    if block_b is None:
        # Single grid step unless the per-call output is big enough (>~1 MiB)
        # to amortize per-step overhead and (on v7x) the cross-core split.
        block_b = B if out_bytes <= (1 << 20) else 128

    bm = min(block_b, B)
    num_tiles = pl.cdiv(B, bm)
    if num_tiles > 1 and bm % 8 != 0:
        # (8, 128) tiling rule: a non-full batch block must be sublane-aligned.
        bm = _round_up(bm, 8)
        num_tiles = pl.cdiv(B, bm)
    grid = (num_tiles,)

    # CostEstimate with per-operand itemsizes so XLA's scheduler sees this
    # custom call for what it is (tiny) and can overlap it.
    cost = pl.CostEstimate(
        flops=2 * B * C * H,
        transcendentals=0,
        bytes_accessed=(
            B * C * jnp.dtype(x.dtype).itemsize
            + C * H * jnp.dtype(w1_t.dtype).itemsize
            + H * jnp.dtype(b1_2d.dtype).itemsize
            + out_bytes
        ),
    )

    semantics = ("parallel",) if num_tiles > 1 else ("arbitrary",)

    out = pl.pallas_call(
        _mlp_policy_kernel,
        out_shape=jax.ShapeDtypeStruct((B, H), out_dtype),
        grid=grid,
        in_specs=[
            pl.BlockSpec((bm, C), lambda i: (i, 0)),   # batch tile (may overhang)
            pl.BlockSpec((C, H), lambda i: (0, 0)),    # weight resident across grid
            pl.BlockSpec((1, H), lambda i: (0, 0)),    # bias resident across grid
        ],
        out_specs=pl.BlockSpec((bm, H), lambda i: (i, 0)),
        compiler_params=pltpu.CompilerParams(
            dimension_semantics=semantics,
        ),
        cost_estimate=cost,
    )(x, w1_t, b1_2d)

    return out


def init_params(key, in_channels, num_action=2, num_hidden1=128):
    """nn.Linear-style uniform(-1/sqrt(fan_in), 1/sqrt(fan_in)) init.

    Weight for affine1 is transposed ONCE here and stored as (C, H) so the
    forward pass never pays for a per-call transpose.
    """
    k1, k2, k3, k4 = jax.random.split(key, 4)
    bound1 = 1.0 / jnp.sqrt(jnp.float32(in_channels))
    w1 = jax.random.uniform(k1, (num_hidden1, in_channels), jnp.float32, -bound1, bound1)
    b1 = jax.random.uniform(k2, (num_hidden1,), jnp.float32, -bound1, bound1)
    bound2 = 1.0 / jnp.sqrt(jnp.float32(num_hidden1))
    w2 = jax.random.uniform(k3, (num_action, num_hidden1), jnp.float32, -bound2, bound2)
    b2 = jax.random.uniform(k4, (num_action,), jnp.float32, -bound2, bound2)
    return {
        "w1_t": w1.T,   # (C, H), pre-transposed for the kernel
        "b1": b1,
        "w2": w2,       # unused in forward() per the reference module
        "b2": b2,
    }


if __name__ == "__main__":
    key = jax.random.PRNGKey(0)
    batch = 32
    in_channels = 16
    num_hidden1 = 128
    num_action = 2

    kx, kp = jax.random.split(key)
    x = jax.random.normal(kx, (batch, in_channels), jnp.float32)
    params = init_params(kp, in_channels, num_action, num_hidden1)

    # Default path: single grid step, no pad, no output slice.
    out = jax.block_until_ready(
        discrete_mlp_policy_forward(x, params["w1_t"], params["b1"])
    )
    ref = jnp.maximum(x @ params["w1_t"] + params["b1"], 0.0)
    assert out.shape == (batch, num_hidden1)
    assert jnp.allclose(out, ref, atol=1e-5, rtol=1e-5)

    # Small, odd batch: block == full batch dim (allowed by the tiling rule),
    # still one grid step, still no pad/slice.
    x_small = x[:10]
    out_small = jax.block_until_ready(
        discrete_mlp_policy_forward(x_small, params["w1_t"], params["b1"])
    )
    ref_small = jnp.maximum(x_small @ params["w1_t"] + params["b1"], 0.0)
    assert out_small.shape == (10, num_hidden1)
    assert jnp.allclose(out_small, ref_small, atol=1e-5, rtol=1e-5)

    # Force the multi-tile path with a ragged last tile to exercise the
    # masked partial-block writeback (88 rows, bm=32 -> 3 tiles, last overhangs).
    x_tiled = jnp.concatenate([x, x, x], axis=0)[:88]
    out_tiled = jax.block_until_ready(
        discrete_mlp_policy_forward(x_tiled, params["w1_t"], params["b1"], block_b=32)
    )
    ref_tiled = jnp.maximum(x_tiled @ params["w1_t"] + params["b1"], 0.0)
    assert out_tiled.shape == (88, num_hidden1)
    assert jnp.allclose(out_tiled, ref_tiled, atol=1e-5, rtol=1e-5)

    print("KERNEL_OK")
</pallas_src>

<mosaic_0001>
module attributes {stable_mosaic.version = 11 : i64} {
  func.func @_mlp_policy_kernel(%arg0: i32, %arg1: memref<32x16xf32, #tpu.memory_space<vmem>>, %arg2: memref<16x128xf32, #tpu.memory_space<vmem>>, %arg3: memref<1x128xf32, #tpu.memory_space<vmem>>, %arg4: memref<32x128xf32, #tpu.memory_space<vmem>>) attributes {dimension_semantics = [#tpu.dimension_semantics<arbitrary>], iteration_bounds = array<i64: 1>, scalar_prefetch = 0 : i64, scratch_operands = 0 : i64, tpu.core_type = #tpu.core_type<tc>, window_params = [{transform_indices = @transform_0, window_bounds = array<i64: 32, 16>}, {pipeline_mode = #tpu.pipeline_mode<synchronous>, transform_indices = @transform_1, window_bounds = array<i64: 16, 128>}, {pipeline_mode = #tpu.pipeline_mode<synchronous>, transform_indices = @transform_2, window_bounds = array<i64: 1, 128>}, {transform_indices = @transform_3, window_bounds = array<i64: 32, 128>}]} {
    %c0 = arith.constant 0 : index
    %c0_0 = arith.constant 0 : index
    %0 = vector.load %arg1[%c0, %c0_0] : memref<32x16xf32, #tpu.memory_space<vmem>>, vector<32x16xf32>
    %c0_1 = arith.constant 0 : index
    %c0_2 = arith.constant 0 : index
    %1 = vector.load %arg2[%c0_1, %c0_2] : memref<16x128xf32, #tpu.memory_space<vmem>>, vector<16x128xf32>
    %cst = arith.constant dense<0.000000e+00> : vector<32x128xf32>
    %2 = tpu.matmul %0, %1, %cst {dimension_numbers = #tpu.dot_dimension_numbers<[1], [0], [0], [1], [0, 0, 1, 1], [], []>} : vector<32x16xf32>, vector<16x128xf32>, vector<32x128xf32> -> vector<32x128xf32>
    %c0_3 = arith.constant 0 : index
    %c0_4 = arith.constant 0 : index
    %3 = vector.load %arg3[%c0_3, %c0_4] : memref<1x128xf32, #tpu.memory_space<vmem>>, vector<1x128xf32>
    %4 = vector.broadcast %3 : vector<1x128xf32> to vector<32x128xf32>
    %5 = arith.addf %2, %4 : vector<32x128xf32>
    %cst_5 = arith.constant 0.000000e+00 : f32
    %6 = vector.broadcast %cst_5 : f32 to vector<32x128xf32>
    %7 = arith.maximumf %5, %6 : vector<32x128xf32>
    %c0_6 = arith.constant 0 : index
    %c0_7 = arith.constant 0 : index
    %8 = vector.load %arg4[%c0_6, %c0_7] : memref<32x128xf32, #tpu.memory_space<vmem>>, vector<32x128xf32>
    tpu.vector_store %arg4[%c0_6, %c0_7], %7 {strides = array<i32>} : memref<32x128xf32, #tpu.memory_space<vmem>>, vector<32x128xf32>,
    return
  }
  func.func @transform_0(%arg0: i32) -> (i32, i32) {
    %c0_i32 = arith.constant 0 : i32
    %c0_i32_0 = arith.constant 0 : i32
    return %arg0, %c0_i32 : i32, i32
  }
  func.func @transform_1(%arg0: i32) -> (i32, i32) {
    %c0_i32 = arith.constant 0 : i32
    %c0_i32_0 = arith.constant 0 : i32
    %c0_i32_1 = arith.constant 0 : i32
    return %c0_i32, %c0_i32_0 : i32, i32
  }
  func.func @transform_2(%arg0: i32) -> (i32, i32) {
    %c0_i32 = arith.constant 0 : i32
    %c0_i32_0 = arith.constant 0 : i32
    %c0_i32_1 = arith.constant 0 : i32
    return %c0_i32, %c0_i32_0 : i32, i32
  }
  func.func @transform_3(%arg0: i32) -> (i32, i32) {
    %c0_i32 = arith.constant 0 : i32
    %c0_i32_0 = arith.constant 0 : i32
    return %arg0, %c0_i32 : i32, i32
  }
}

</mosaic_0001>

<bundles_post_ra>
// kernel: tpu_custom_call.1
= control target key start
LH: loop header
LB: loop body
LE: loop exit
PB: predicated region body
PF: predicated region fallthrough
CT: control target
= control target key end

     0   :  { %vm28_vm0 = vcmask 130048   ;;  %s260_s0 = inlined_call_operand.vmem [shape: f32[32,16], index: 0, kind: input, shape index: {}]   ;;  %s261_s1 = inlined_call_operand.vmem [shape: f32[16,128], index: 1, kind: input, shape index: {}]   ;;  %s262_s2 = inlined_call_operand.vmem [shape: f32[1,128], index: 2, kind: input, shape index: {}]   ;;  %s263_s3 = inlined_call_operand.hbm [shape: f32[32,128], index: 3, kind: output, shape index: {}]  }
   0x1   :  { %v19_v0 = vld [vmem:[%s261_s1] sm:$0xff]  ;;  %v20_v1 = vld [vmem:[%s261_s1 + $0x8] sm:$0xff]  ;;  %v17_v4 = vld [vmem:[%s260_s0 + $0x10] sm:$0xff] }
   0x2   :  { %v15_v2 = vld [vmem:[%s260_s0] sm:$0xff]  ;;  %v171_v3 = vpack.c.bf16 %v20_v1, %v19_v0  ;;  %168 = vmatprep.mubr.msk.f32.mxu1 %vm28_vm0, %v17_v4 }
   0x3   :  { %165 = vmatprep.mubr.msk.f32.mxu0 %vm28_vm0, %v15_v2 }
   0x4   :  { %8 = vsyncpa [#allocation3], 0  ;;  %172 = vmatprep.subr.bf16.mxu0 %v171_v3  ;;  %175 = vmatprep.subr.bf16.mxu1 %v171_v3  ;;  %v16_v5 = vld [vmem:[%s260_s0 + $0x8] sm:$0xff]  ;;  %v18_v6 = vld [vmem:[%s260_s0 + $0x18] sm:$0xff]  ;;  %s204_s25 = smov [#allocation2]  }
   0x5   :  { %174 = vmatpush3.bf16.msra.mxu0 %v171_v3  ;;  %176 = vmatpush3.bf16.msra.mxu1 %v171_v3  ;;  %v150_v7 = vld [vmem:[%s262_s2] ss:$0 sm:$0xff]  ;;  %s139_s26 = sshll.u32 %s204_s25, 4  ;;  %s140_s26 = int_to_ptr.vmem [resolvable:$true] %s139_s26 }
   0x6   :  { %s180_s0 = scalar_lea.vmem %s140_s26, 512  ;;  %p185_p1 = scmp.lt.s32.totalorder %s140_s26, %s140_s26 }
   0x7   :  { %p181_p0 = scmp.ne.s32.totalorder %s140_s26, %s180_s0  ;;  %p186_p2 = scmp.lt.s32.totalorder %s180_s0, %s180_s0 }
   0x8   :  { %166 = vmatmul.mubr.msk.f32.vlgmr.msra.gmra.mrb[0].mxu0 %vm28_vm0, %v16_v5  ;;  %169 = vmatmul.mubr.msk.f32.vlgmr.msra.gmra.mrb[0].mxu1 %vm28_vm0, %v18_v6 }
   0x9   :  { %p187_p3 = por %p186_p2, %p185_p1 }
   0xb   :  { %p188_p4 = pnand %p187_p3, %p181_p0 }
  0xdb   :  { %v167_v8 = vpop.f32.mrb[0].mxu0  ;;  %v170_v9 = vpop.f32.mrb[0].mxu1 }
  0xdc   :  { %v113_v10 = vadd.f32 %v167_v8, %v150_v7  ;;  %v123_v11 = vadd.f32 %v170_v9, %v150_v7  ;;  %v107_v12 = vpop.f32.mrb[1].mxu0  ;;  %v117_v13 = vpop.f32.mrb[1].mxu1 }
  0xdd   :  { %v108_v14 = vadd.f32 %v150_v7, %v107_v12  ;;  %v118_v15 = vadd.f32 %v150_v7, %v117_v13 }
  0xde   :  { %v127_v16 = vmax.f32 %v113_v10, 0.0  ;;  %v129_v17 = vmax.f32 %v123_v11, 0.0 }
  0xdf   :  { %v126_v18 = vmax.f32 %v108_v14, 0.0  ;;  %v128_v19 = vmax.f32 %v118_v15, 0.0 }
  0xe0   :  { %131 = vst [vmem:[#allocation2 + $0x8] sm:$0xff] %v127_v16  ;;  %133 = vst [vmem:[#allocation2 + $0x18] sm:$0xff] %v129_v17 }
  0xe1   :  { %130 = vst [vmem:[#allocation2] sm:$0xff] %v126_v18  ;;  %132 = vst [vmem:[#allocation2 + $0x10] sm:$0xff] %v128_v19 }
  0xe2   :  { %191 = shalt.err (!%p188_p4)
}
  0xe3   :  { %s192_s28 = scalar_lea.hbm %s263_s3, 512 }
  0xe4   :  { %p193_p5 = scmp.ne.s32.totalorder %s263_s3, %s192_s28  ;;  %p196_p6 = scmp.lt.u32.totalorder %s192_s28, %s263_s3 }
  0xe6   :  { %p198_p7 = pnand %p196_p6, %p193_p5 }
  0xe8   :  { %201 = shalt.err (!%p198_p7)
}
  0xe9   :  { %s205_s6 = smov 128   ;;  %s206_s7 = smov 8  }
  0xea   :  { %145 = dma.vmem_to_hbm [thread:$0]  %s140_s26, 512, %s263_s3, [#allocation3], %s205_s6, %s205_s6, %s206_s7  }
  0xeb   :  { %202 = dma.done.wait [#allocation3], 512  }
  0xec   :  { %203 = vsyncadd [#allocation3], 4294966784 }
  0xed   :  { %149 = vsyncpa [#allocation3], 1 }

</bundles_post_ra>
